<compile_context>
chip_gen: v7x
topology: tpu7x:2x2x1
jax: 0.10.0
libtpu: 0.0.40
codegen_flags: <defaults>
</compile_context>

<pallas_src>
import functools

import jax
import jax.numpy as jnp
import numpy as np
from jax import lax
from jax.experimental import pallas as pl
from jax.experimental.pallas import tpu as pltpu

EPS = 1e-5  # torch.nn.LayerNorm default


def _round_up(x, m):
    return ((x + m - 1) // m) * m


# ----------------------------------------------------------------------------
# Pallas kernel: fused (conv||gate) matmul on the MXU, masked per-sample
# LayerNorm over the real (L_out, C_out) block, gating, channel-major store.
# ----------------------------------------------------------------------------
def _gated_ln_tconv_kernel(x_ref, w_ref, b_ref, gamma_ref, beta_ref, mask_ref,
                           o_ref, *, batch_tile, l_pad, c_pad, c_out, n_valid):
    """One batch tile.

    x_ref:     (batch_tile*l_pad, J_pad)   im2col rows (compute dtype, zero-padded)
    w_ref:     (J_pad, 2*c_pad)            fused conv||gate weight slab
    b_ref:     (1, 2*c_pad)                fused bias (f32, zero in padded channels)
    gamma_ref: (l_pad, 2*c_pad)            fused LN weight, (L, C) layout
    beta_ref:  (l_pad, 2*c_pad)            fused LN bias
    mask_ref:  (l_pad, 2*c_pad)            1.0 at real (l, c), 0.0 at padding (f32)
    o_ref:     (batch_tile, c_out, l_pad)  gated output, channel-major (f32)
    """
    c2 = 2 * c_pad
    # Single fused MXU matmul for both branches; f32 accumulation.
    z2 = jnp.dot(x_ref[...], w_ref[...], preferred_element_type=jnp.float32)
    # (TB*L, 2C) -> (TB, L, 2C): free sublane regrouping since l_pad % 8 == 0.
    z = z2.reshape(batch_tile, l_pad, c2)
    mask = mask_ref[...]
    z = (z + b_ref[...]) * mask                 # zero padded rows / channels
    gamma = gamma_ref[...].astype(jnp.float32)
    beta = beta_ref[...].astype(jnp.float32)
    inv_n = 1.0 / float(n_valid)

    def layer_norm(zb, g, b, m):
        # Per-sample stats over the real (L_out, C_out) block only.
        s = jnp.sum(jnp.sum(zb, axis=2, keepdims=True), axis=1, keepdims=True)
        mean = s * inv_n
        cent = (zb - mean) * m                  # shared by var and normalize
        ss = jnp.sum(jnp.sum(cent * cent, axis=2, keepdims=True),
                     axis=1, keepdims=True)
        inv_std = lax.rsqrt(ss * inv_n + EPS)
        return cent * inv_std * g + b

    # conv/gate split at lane offset c_pad (multiple of 128): pure vreg views.
    conv = layer_norm(z[..., :c_pad], gamma[:, :c_pad], beta[:, :c_pad],
                      mask[:, :c_pad])
    gate = layer_norm(z[..., c_pad:], gamma[:, c_pad:], beta[:, c_pad:],
                      mask[:, c_pad:])
    y = jnp.tanh(conv) * jax.nn.sigmoid(gate)   # (TB, L, C_pad) f32
    # Channel-major store: in-kernel XLU transpose replaces the wrapper-side
    # full-output HBM transpose of the previous version.
    y_t = jnp.swapaxes(y, 1, 2)                 # (TB, C_pad, L)
    o_ref[...] = y_t[:, :c_out, :].astype(o_ref.dtype)


# ----------------------------------------------------------------------------
# Static tap tables for the transpose-conv gather (hyperparameter-only).
# ----------------------------------------------------------------------------
def _tap_index_table(L_in, L_out, K, stride, padding, dilation):
    """(L_out, K) tables: source index li and validity for each (lo, k)."""
    lo = np.arange(L_out)[:, None]
    k = np.arange(K)[None, :]
    t = lo + padding - k * dilation
    valid = (t >= 0) & (t % stride == 0) & (t // stride < L_in)
    li = np.clip(np.where(valid, t // stride, 0), 0, L_in - 1)
    return li.astype(np.int32), valid


def gated_ln_transpose_conv1d(x, params, *, stride, padding, dilation,
                              out_padding, batch_tile=8,
                              compute_dtype=jnp.bfloat16,
                              lane_align=128, vmem_budget_bytes=None):
    """x: (N, C_in, L_in) float32 -> (N, C_out, L_out) float32."""
    (w_conv, b_conv, w_gate, b_gate, lnw_c, lnb_c, lnw_g, lnb_g) = params
    N, C_in, L_in = x.shape
    _, C_out, K = w_conv.shape
    L_out = (L_in - 1) * stride - 2 * padding + dilation * (K - 1) + out_padding + 1
    J = K * C_in

    # ---- lane / sublane aligned padded dims ----
    # lane_align=128 is enough for v5e's 4x128 MXU; pass 256 on v6e/v7x.
    J_pad = _round_up(J, lane_align)        # contraction: x lanes / W sublanes
    C_pad = _round_up(C_out, lane_align)    # per-branch channels (aligned split)
    C2p = 2 * C_pad
    L_pad = _round_up(L_out, 8)             # sublane alignment for the regroup

    # ---- batch tile: >=2 grid steps (megacore) + VMEM-budgeted size ----
    cd_size = np.dtype(compute_dtype).itemsize

    def step_vmem_bytes(tb_):
        stream = (2 * tb_ * L_pad * J_pad * cd_size       # x block (double-buffered)
                  + 2 * tb_ * C_out * L_pad * 4)          # out block (double-buffered)
        resident = (J_pad * C2p * cd_size + C2p * 4
                    + 2 * L_pad * C2p * cd_size           # gamma, beta
                    + L_pad * C2p * 4)                    # mask
        live = 4 * tb_ * L_pad * C2p * 4                  # z / cent / branch temps
        return stream + resident + live

    tb = max(1, min(batch_tile, N))
    if N >= 2:                      # keep >=2 steps so v7x's 2 TCs both get work
        tb = min(tb, pl.cdiv(N, 2))
    budget = vmem_budget_bytes if vmem_budget_bytes is not None else (48 << 20)
    while tb > 1 and step_vmem_bytes(tb) > budget:
        tb = max(1, tb // 2)
    vmem_limit = int(min(max(2 * step_vmem_bytes(tb), 32 << 20),
                         max(64 << 20, budget)))

    num_tiles = pl.cdiv(N, tb)
    N_pad = num_tiles * tb

    # ---- compact im2col of the zero-dilated input (XLA gather) ----
    li_idx, valid = _tap_index_table(L_in, L_out, K, stride, padding, dilation)
    xc = x.astype(compute_dtype)                              # cast BEFORE gather
    x_t = jnp.transpose(xc, (0, 2, 1))                        # (N, L_in, C_in)
    g = jnp.take(x_t, jnp.asarray(li_idx.reshape(-1)), axis=1)  # (N, L_out*K, C_in)
    g = g.reshape(N, L_out, K, C_in) * jnp.asarray(valid, dtype=compute_dtype)[None, :, :, None]
    x_col = g.reshape(N, L_out, J)
    x_col = jnp.pad(x_col, ((0, N_pad - N), (0, L_pad - L_out), (0, J_pad - J)))
    # Matmul M dimension per grid step = tb * L_pad (sublane-aligned).
    x2 = x_col.reshape(N_pad * L_pad, J_pad)

    # ---- fused, lane-padded parameter slabs (traced JAX; hoisted under jit) ----
    def w_slab(w):   # (C_in, C_out, K) -> (J_pad, C_pad), rows ordered (k, ci)
        s = jnp.transpose(w, (2, 0, 1)).reshape(J, C_out)
        return jnp.pad(s, ((0, J_pad - J), (0, C_pad - C_out)))

    def ln_slab(p):  # (C_out, L_out) -> (L_pad, C_pad), (L, C) layout
        return jnp.pad(jnp.transpose(p), ((0, L_pad - L_out), (0, C_pad - C_out)))

    W = jnp.concatenate([w_slab(w_conv), w_slab(w_gate)], axis=1).astype(compute_dtype)
    bias = jnp.concatenate([jnp.pad(b_conv, (0, C_pad - C_out)),
                            jnp.pad(b_gate, (0, C_pad - C_out))]
                           ).reshape(1, C2p).astype(jnp.float32)
    gamma = jnp.concatenate([ln_slab(lnw_c), ln_slab(lnw_g)], axis=1).astype(compute_dtype)
    beta = jnp.concatenate([ln_slab(lnb_c), ln_slab(lnb_g)], axis=1).astype(compute_dtype)
    m = jnp.pad(jnp.ones((L_out, C_out), jnp.float32),
                ((0, L_pad - L_out), (0, C_pad - C_out)))
    mask = jnp.concatenate([m, m], axis=1)

    # Resident operands: constant index_map keeps them in VMEM across steps;
    # single-buffer them when the installed jax supports pipeline_mode.
    def resident_spec(shape):
        index_map = lambda i, _n=len(shape): (0,) * _n
        try:
            return pl.BlockSpec(shape, index_map, pipeline_mode=pl.Buffered(1))
        except Exception:  # older jax: no pipeline_mode / Buffered -> double-buffered
            return pl.BlockSpec(shape, index_map)

    kernel = functools.partial(_gated_ln_tconv_kernel, batch_tile=tb, l_pad=L_pad,
                               c_pad=C_pad, c_out=C_out, n_valid=L_out * C_out)
    out = pl.pallas_call(
        kernel,
        out_shape=jax.ShapeDtypeStruct((N_pad, C_out, L_pad), jnp.float32),
        grid=(num_tiles,),
        in_specs=[
            pl.BlockSpec((tb * L_pad, J_pad), lambda i: (i, 0)),  # streamed im2col rows
            resident_spec((J_pad, C2p)),                          # fused weights
            resident_spec((1, C2p)),                              # fused bias
            resident_spec((L_pad, C2p)),                          # LN gamma
            resident_spec((L_pad, C2p)),                          # LN beta
            resident_spec((L_pad, C2p)),                          # validity mask
        ],
        out_specs=pl.BlockSpec((tb, C_out, L_pad), lambda i: (i, 0, 0)),
        compiler_params=pltpu.CompilerParams(
            dimension_semantics=("parallel",),
            vmem_limit_bytes=vmem_limit),
    )(x2, W, bias, gamma, beta, mask)

    out = out[:N]                      # drop batch padding
    if L_pad != L_out:
        out = out[:, :, :L_out]        # drop length padding
    return out                         # already (N, C_out, L_out): no transpose


# ----------------------------------------------------------------------------
# Pure-JAX reference (direct ConvTranspose1d loops + LayerNorm) for checking.
# ----------------------------------------------------------------------------
def _ref_conv_transpose(x, w, b, stride, padding, dilation, L_out):
    N, C_in, L_in = x.shape
    C_out, K = w.shape[1], w.shape[2]
    y = jnp.zeros((N, C_out, L_out), jnp.float32)
    for k in range(K):
        for li in range(L_in):
            lo = li * stride - padding + k * dilation
            if 0 <= lo < L_out:
                y = y.at[:, :, lo].add(jnp.einsum('ni,io->no', x[:, :, li], w[:, :, k]))
    return y + b[None, :, None]


def _ref_layernorm(z, w, b):
    mean = jnp.mean(z, axis=(1, 2), keepdims=True)
    var = jnp.mean((z - mean) ** 2, axis=(1, 2), keepdims=True)
    return (z - mean) * lax.rsqrt(var + EPS) * w[None] + b[None]


def _ref_forward(x, params, *, stride, padding, dilation, out_padding):
    (w_conv, b_conv, w_gate, b_gate, lnw_c, lnb_c, lnw_g, lnb_g) = params
    K = w_conv.shape[2]
    L_in = x.shape[2]
    L_out = (L_in - 1) * stride - 2 * padding + dilation * (K - 1) + out_padding + 1
    c = _ref_layernorm(
        _ref_conv_transpose(x, w_conv, b_conv, stride, padding, dilation, L_out),
        lnw_c, lnb_c)
    g = _ref_layernorm(
        _ref_conv_transpose(x, w_gate, b_gate, stride, padding, dilation, L_out),
        lnw_g, lnb_g)
    return jnp.tanh(c) * jax.nn.sigmoid(g)


if __name__ == "__main__":
    # Module hyper-params (small, consistent with the PyTorch module).
    N, C_in, L_in = 2, 4, 16
    C_out, K = 8, 3
    stride, padding, dilation, out_padding = 2, 1, 1, 1
    L_out = (L_in - 1) * stride - 2 * padding + dilation * (K - 1) + out_padding + 1  # 32

    key = jax.random.PRNGKey(0)
    ks = jax.random.split(key, 10)

    bound = 1.0 / np.sqrt(C_out * K)
    w_conv = jax.random.uniform(ks[0], (C_in, C_out, K), jnp.float32, -bound, bound)
    b_conv = jax.random.uniform(ks[1], (C_out,), jnp.float32, -bound, bound)
    w_gate = jax.random.uniform(ks[2], (C_in, C_out, K), jnp.float32, -bound, bound)
    b_gate = jax.random.uniform(ks[3], (C_out,), jnp.float32, -bound, bound)
    lnw_c = jnp.ones((C_out, L_out), jnp.float32) + 0.1 * jax.random.normal(ks[4], (C_out, L_out))
    lnb_c = 0.1 * jax.random.normal(ks[5], (C_out, L_out))
    lnw_g = jnp.ones((C_out, L_out), jnp.float32) + 0.1 * jax.random.normal(ks[6], (C_out, L_out))
    lnb_g = 0.1 * jax.random.normal(ks[7], (C_out, L_out))
    params = (w_conv, b_conv, w_gate, b_gate, lnw_c, lnb_c, lnw_g, lnb_g)

    hyper = dict(stride=stride, padding=padding, dilation=dilation,
                 out_padding=out_padding)

    # --- check 1: small batch (N=2 -> tb=1, 2 grid steps), f32 operands, tight tol ---
    x_small = jax.random.normal(ks[8], (N, C_in, L_in), jnp.float32)
    fwd_f32 = jax.jit(functools.partial(gated_ln_transpose_conv1d,
                                        compute_dtype=jnp.float32, **hyper))
    out_small = jax.block_until_ready(fwd_f32(x_small, params))
    ref_small = _ref_forward(x_small, params, **hyper)
    np.testing.assert_allclose(np.asarray(out_small), np.asarray(ref_small),
                               rtol=1e-5, atol=1e-5)
    assert out_small.shape == (N, C_out, L_out)

    # --- check 2: multi-tile grid (N=16 -> 2 grid steps of tb=8), bf16 operands ---
    N_big = 16
    x_big = jax.random.normal(ks[9], (N_big, C_in, L_in), jnp.float32)
    fwd_bf16 = jax.jit(functools.partial(gated_ln_transpose_conv1d,
                                         compute_dtype=jnp.bfloat16, **hyper))
    out_big = jax.block_until_ready(fwd_bf16(x_big, params))
    ref_big = _ref_forward(x_big, params, **hyper)
    np.testing.assert_allclose(np.asarray(out_big), np.asarray(ref_big),
                               rtol=4e-2, atol=4e-2)
    assert out_big.shape == (N_big, C_out, L_out)

    print("KERNEL_OK")
</pallas_src>

<mosaic_0001>
module attributes {stable_mosaic.version = 11 : i64} {
  func.func @_gated_ln_tconv_kernel(%arg0: i32, %arg1: memref<32x128xf32, #tpu.memory_space<vmem>>, %arg2: memref<128x256xf32, #tpu.memory_space<vmem>>, %arg3: memref<1x256xf32, #tpu.memory_space<vmem>>, %arg4: memref<32x256xf32, #tpu.memory_space<vmem>>, %arg5: memref<32x256xf32, #tpu.memory_space<vmem>>, %arg6: memref<32x256xf32, #tpu.memory_space<vmem>>, %arg7: memref<1x8x32xf32, #tpu.memory_space<vmem>>) attributes {dimension_semantics = [#tpu.dimension_semantics<parallel>], iteration_bounds = array<i64: 2>, scalar_prefetch = 0 : i64, scratch_operands = 0 : i64, tpu.core_type = #tpu.core_type<tc>, window_params = [{transform_indices = @transform_0, window_bounds = array<i64: 32, 128>}, {pipeline_mode = #tpu.pipeline_mode<synchronous>, transform_indices = @transform_1, window_bounds = array<i64: 128, 256>}, {pipeline_mode = #tpu.pipeline_mode<synchronous>, transform_indices = @transform_2, window_bounds = array<i64: 1, 256>}, {pipeline_mode = #tpu.pipeline_mode<synchronous>, transform_indices = @transform_3, window_bounds = array<i64: 32, 256>}, {pipeline_mode = #tpu.pipeline_mode<synchronous>, transform_indices = @transform_4, window_bounds = array<i64: 32, 256>}, {pipeline_mode = #tpu.pipeline_mode<synchronous>, transform_indices = @transform_5, window_bounds = array<i64: 32, 256>}, {transform_indices = @transform_6, window_bounds = array<i64: 1, 8, 32>}]} {
    %c0 = arith.constant 0 : index
    %c0_0 = arith.constant 0 : index
    %0 = vector.load %arg1[%c0, %c0_0] : memref<32x128xf32, #tpu.memory_space<vmem>>, vector<32x128xf32>
    %c0_1 = arith.constant 0 : index
    %c0_2 = arith.constant 0 : index
    %1 = vector.load %arg2[%c0_1, %c0_2] : memref<128x256xf32, #tpu.memory_space<vmem>>, vector<128x256xf32>
    %cst = arith.constant dense<0.000000e+00> : vector<32x256xf32>
    %2 = tpu.matmul %0, %1, %cst {dimension_numbers = #tpu.dot_dimension_numbers<[1], [0], [0], [1], [0, 0, 1, 1], [], []>} : vector<32x128xf32>, vector<128x256xf32>, vector<32x256xf32> -> vector<32x256xf32>
    %3 = vector.shape_cast %2 : vector<32x256xf32> to vector<1x32x256xf32>
    %c0_3 = arith.constant 0 : index
    %c0_4 = arith.constant 0 : index
    %4 = vector.load %arg6[%c0_3, %c0_4] : memref<32x256xf32, #tpu.memory_space<vmem>>, vector<32x256xf32>
    %c0_5 = arith.constant 0 : index
    %c0_6 = arith.constant 0 : index
    %5 = vector.load %arg3[%c0_5, %c0_6] : memref<1x256xf32, #tpu.memory_space<vmem>>, vector<1x256xf32>
    %6 = vector.shape_cast %5 : vector<1x256xf32> to vector<1x1x256xf32>
    %7 = vector.broadcast %6 : vector<1x1x256xf32> to vector<1x32x256xf32>
    %8 = arith.addf %3, %7 : vector<1x32x256xf32>
    %9 = vector.shape_cast %4 : vector<32x256xf32> to vector<1x32x256xf32>
    %10 = arith.mulf %8, %9 : vector<1x32x256xf32>
    %c0_7 = arith.constant 0 : index
    %c0_8 = arith.constant 0 : index
    %11 = vector.load %arg4[%c0_7, %c0_8] : memref<32x256xf32, #tpu.memory_space<vmem>>, vector<32x256xf32>
    %c0_9 = arith.constant 0 : index
    %c0_10 = arith.constant 0 : index
    %12 = vector.load %arg5[%c0_9, %c0_10] : memref<32x256xf32, #tpu.memory_space<vmem>>, vector<32x256xf32>
    %13 = vector.extract_strided_slice %10 {offsets = [0, 0, 0], sizes = [1, 32, 128], strides = [1, 1, 1]} : vector<1x32x256xf32> to vector<1x32x128xf32>
    %14 = vector.extract_strided_slice %11 {offsets = [0, 0], sizes = [32, 128], strides = [1, 1]} : vector<32x256xf32> to vector<32x128xf32>
    %15 = vector.extract_strided_slice %12 {offsets = [0, 0], sizes = [32, 128], strides = [1, 1]} : vector<32x256xf32> to vector<32x128xf32>
    %16 = vector.extract_strided_slice %4 {offsets = [0, 0], sizes = [32, 128], strides = [1, 1]} : vector<32x256xf32> to vector<32x128xf32>
    %cst_11 = arith.constant dense<0.000000e+00> : vector<1x32xf32>
    %17 = vector.multi_reduction <add>, %13, %cst_11 [2] : vector<1x32x128xf32> to vector<1x32xf32>
    %18 = vector.shape_cast %17 : vector<1x32xf32> to vector<1x32x1xf32>
    %cst_12 = arith.constant dense<0.000000e+00> : vector<1x1xf32>
    %19 = vector.multi_reduction <add>, %18, %cst_12 [1] : vector<1x32x1xf32> to vector<1x1xf32>
    %20 = vector.shape_cast %19 : vector<1x1xf32> to vector<1x1x1xf32>
    %cst_13 = arith.constant 3.906250e-03 : f32
    %21 = vector.broadcast %cst_13 : f32 to vector<1x1x1xf32>
    %22 = arith.mulf %20, %21 : vector<1x1x1xf32>
    %23 = vector.broadcast %22 : vector<1x1x1xf32> to vector<1x32x128xf32>
    %24 = arith.subf %13, %23 : vector<1x32x128xf32>
    %25 = vector.shape_cast %16 : vector<32x128xf32> to vector<1x32x128xf32>
    %26 = arith.mulf %24, %25 : vector<1x32x128xf32>
    %27 = arith.mulf %26, %26 : vector<1x32x128xf32>
    %cst_14 = arith.constant dense<0.000000e+00> : vector<1x32xf32>
    %28 = vector.multi_reduction <add>, %27, %cst_14 [2] : vector<1x32x128xf32> to vector<1x32xf32>
    %29 = vector.shape_cast %28 : vector<1x32xf32> to vector<1x32x1xf32>
    %cst_15 = arith.constant dense<0.000000e+00> : vector<1x1xf32>
    %30 = vector.multi_reduction <add>, %29, %cst_15 [1] : vector<1x32x1xf32> to vector<1x1xf32>
    %31 = vector.shape_cast %30 : vector<1x1xf32> to vector<1x1x1xf32>
    %cst_16 = arith.constant 3.906250e-03 : f32
    %32 = vector.broadcast %cst_16 : f32 to vector<1x1x1xf32>
    %33 = arith.mulf %31, %32 : vector<1x1x1xf32>
    %cst_17 = arith.constant 9.99999974E-6 : f32
    %34 = vector.broadcast %cst_17 : f32 to vector<1x1x1xf32>
    %35 = arith.addf %33, %34 : vector<1x1x1xf32>
    %36 = math.rsqrt %35 : vector<1x1x1xf32>
    %37 = vector.broadcast %36 : vector<1x1x1xf32> to vector<1x32x128xf32>
    %38 = arith.mulf %26, %37 : vector<1x32x128xf32>
    %39 = vector.shape_cast %14 : vector<32x128xf32> to vector<1x32x128xf32>
    %40 = arith.mulf %38, %39 : vector<1x32x128xf32>
    %41 = vector.shape_cast %15 : vector<32x128xf32> to vector<1x32x128xf32>
    %42 = arith.addf %40, %41 : vector<1x32x128xf32>
    %43 = vector.extract_strided_slice %10 {offsets = [0, 0, 128], sizes = [1, 32, 128], strides = [1, 1, 1]} : vector<1x32x256xf32> to vector<1x32x128xf32>
    %44 = vector.extract_strided_slice %11 {offsets = [0, 128], sizes = [32, 128], strides = [1, 1]} : vector<32x256xf32> to vector<32x128xf32>
    %45 = vector.extract_strided_slice %12 {offsets = [0, 128], sizes = [32, 128], strides = [1, 1]} : vector<32x256xf32> to vector<32x128xf32>
    %46 = vector.extract_strided_slice %4 {offsets = [0, 128], sizes = [32, 128], strides = [1, 1]} : vector<32x256xf32> to vector<32x128xf32>
    %cst_18 = arith.constant dense<0.000000e+00> : vector<1x32xf32>
    %47 = vector.multi_reduction <add>, %43, %cst_18 [2] : vector<1x32x128xf32> to vector<1x32xf32>
    %48 = vector.shape_cast %47 : vector<1x32xf32> to vector<1x32x1xf32>
    %cst_19 = arith.constant dense<0.000000e+00> : vector<1x1xf32>
    %49 = vector.multi_reduction <add>, %48, %cst_19 [1] : vector<1x32x1xf32> to vector<1x1xf32>
    %50 = vector.shape_cast %49 : vector<1x1xf32> to vector<1x1x1xf32>
    %cst_20 = arith.constant 3.906250e-03 : f32
    %51 = vector.broadcast %cst_20 : f32 to vector<1x1x1xf32>
    %52 = arith.mulf %50, %51 : vector<1x1x1xf32>
    %53 = vector.broadcast %52 : vector<1x1x1xf32> to vector<1x32x128xf32>
    %54 = arith.subf %43, %53 : vector<1x32x128xf32>
    %55 = vector.shape_cast %46 : vector<32x128xf32> to vector<1x32x128xf32>
    %56 = arith.mulf %54, %55 : vector<1x32x128xf32>
    %57 = arith.mulf %56, %56 : vector<1x32x128xf32>
    %cst_21 = arith.constant dense<0.000000e+00> : vector<1x32xf32>
    %58 = vector.multi_reduction <add>, %57, %cst_21 [2] : vector<1x32x128xf32> to vector<1x32xf32>
    %59 = vector.shape_cast %58 : vector<1x32xf32> to vector<1x32x1xf32>
    %cst_22 = arith.constant dense<0.000000e+00> : vector<1x1xf32>
    %60 = vector.multi_reduction <add>, %59, %cst_22 [1] : vector<1x32x1xf32> to vector<1x1xf32>
    %61 = vector.shape_cast %60 : vector<1x1xf32> to vector<1x1x1xf32>
    %cst_23 = arith.constant 3.906250e-03 : f32
    %62 = vector.broadcast %cst_23 : f32 to vector<1x1x1xf32>
    %63 = arith.mulf %61, %62 : vector<1x1x1xf32>
    %cst_24 = arith.constant 9.99999974E-6 : f32
    %64 = vector.broadcast %cst_24 : f32 to vector<1x1x1xf32>
    %65 = arith.addf %63, %64 : vector<1x1x1xf32>
    %66 = math.rsqrt %65 : vector<1x1x1xf32>
    %67 = vector.broadcast %66 : vector<1x1x1xf32> to vector<1x32x128xf32>
    %68 = arith.mulf %56, %67 : vector<1x32x128xf32>
    %69 = vector.shape_cast %44 : vector<32x128xf32> to vector<1x32x128xf32>
    %70 = arith.mulf %68, %69 : vector<1x32x128xf32>
    %71 = vector.shape_cast %45 : vector<32x128xf32> to vector<1x32x128xf32>
    %72 = arith.addf %70, %71 : vector<1x32x128xf32>
    %73 = math.tanh %42 : vector<1x32x128xf32>
    %74 = arith.negf %72 : vector<1x32x128xf32>
    %75 = math.exp %74 : vector<1x32x128xf32>
    %cst_25 = arith.constant 1.000000e+00 : f32
    %76 = vector.broadcast %cst_25 : f32 to vector<1x32x128xf32>
    %77 = arith.addf %76, %75 : vector<1x32x128xf32>
    %78 = arith.divf %76, %77 : vector<1x32x128xf32>
    %79 = arith.mulf %73, %78 : vector<1x32x128xf32>
    %80 = tpu.transpose %79, [0, 2, 1] : vector<1x32x128xf32> -> vector<1x128x32xf32>
    %81 = vector.extract_strided_slice %80 {offsets = [0, 0, 0], sizes = [1, 8, 32], strides = [1, 1, 1]} : vector<1x128x32xf32> to vector<1x8x32xf32>
    %c0_26 = arith.constant 0 : index
    %c0_27 = arith.constant 0 : index
    %c0_28 = arith.constant 0 : index
    %82 = vector.load %arg7[%c0_26, %c0_27, %c0_28] : memref<1x8x32xf32, #tpu.memory_space<vmem>>, vector<1x8x32xf32>
    tpu.vector_store %arg7[%c0_26, %c0_27, %c0_28], %81 {strides = array<i32>} : memref<1x8x32xf32, #tpu.memory_space<vmem>>, vector<1x8x32xf32>,
    return
  }
  func.func @transform_0(%arg0: i32) -> (i32, i32) {
    %c0_i32 = arith.constant 0 : i32
    %c0_i32_0 = arith.constant 0 : i32
    return %arg0, %c0_i32 : i32, i32
  }
  func.func @transform_1(%arg0: i32) -> (i32, i32) {
    %c0_i32 = arith.constant 0 : i32
    %c0_i32_0 = arith.constant 0 : i32
    %c0_i32_1 = arith.constant 0 : i32
    return %c0_i32, %c0_i32_0 : i32, i32
  }
  func.func @transform_2(%arg0: i32) -> (i32, i32) {
    %c0_i32 = arith.constant 0 : i32
    %c0_i32_0 = arith.constant 0 : i32
    %c0_i32_1 = arith.constant 0 : i32
    return %c0_i32, %c0_i32_0 : i32, i32
  }
  func.func @transform_3(%arg0: i32) -> (i32, i32) {
    %c0_i32 = arith.constant 0 : i32
    %c0_i32_0 = arith.constant 0 : i32
    %c0_i32_1 = arith.constant 0 : i32
    return %c0_i32, %c0_i32_0 : i32, i32
  }
  func.func @transform_4(%arg0: i32) -> (i32, i32) {
    %c0_i32 = arith.constant 0 : i32
    %c0_i32_0 = arith.constant 0 : i32
    %c0_i32_1 = arith.constant 0 : i32
    return %c0_i32, %c0_i32_0 : i32, i32
  }
  func.func @transform_5(%arg0: i32) -> (i32, i32) {
    %c0_i32 = arith.constant 0 : i32
    %c0_i32_0 = arith.constant 0 : i32
    %c0_i32_1 = arith.constant 0 : i32
    return %c0_i32, %c0_i32_0 : i32, i32
  }
  func.func @transform_6(%arg0: i32) -> (i32, i32, i32) {
    %c0_i32 = arith.constant 0 : i32
    %c0_i32_0 = arith.constant 0 : i32
    %c0_i32_1 = arith.constant 0 : i32
    return %arg0, %c0_i32, %c0_i32_0 : i32, i32, i32
  }
}

</mosaic_0001>

<bundles_post_ra>
// kernel: gated_ln_transpose_conv1d.1
= control target key start
LH: loop header
LB: loop body
LE: loop exit
PB: predicated region body
PF: predicated region fallthrough
CT: control target
= control target key end

     0   :  { %11 = vsyncpa [#allocation3], 0  ;;  %s1250_s0 = inlined_call_operand.vmem [shape: f32[64,128], index: 0, kind: input, shape index: {}]   ;;  %s1251_s1 = inlined_call_operand.vmem [shape: f32[128,256], index: 1, kind: input, shape index: {}]   ;;  %s1252_s2 = inlined_call_operand.vmem [shape: f32[1,256], index: 2, kind: input, shape index: {}]   ;;  %s1253_s3 = inlined_call_operand.vmem [shape: f32[32,256], index: 3, kind: input, shape index: {}]   ;;  %s1254_s4 = inlined_call_operand.vmem [shape: f32[32,256], index: 4, kind: input, shape index: {}]   ;;  %s1255_s5 = inlined_call_operand.vmem [shape: f32[32,256], index: 5, kind: input, shape index: {}]   ;;  %s1256_s6 = inlined_call_operand.hbm [shape: f32[2,8,32], index: 6, kind: output, shape index: {}]  }
   0x1   :  { %13 = vsyncpa [#allocation3 + $0x1], 0  ;;  %s924_s21 = smov 0   ;;  %s926_s22 = smov 0  }
   0x2   :  { %s928_s23 = smov 0   ;;  %s930_s24 = smov 0  }
   0x3 LB: > { %s945_s25 = sadd.s32 4294967295, %s885_s24   ;;  %s692_s26 = sadd.s32 4294967294, %s885_s24   ;;  %s885_s24 = sphi %s930_s24, %s1262_s24   ;;  %s881_s23 = sphi %s928_s23, %s1261_s23   ;;  %s877_s22 = sphi %s926_s22, %s1260_s22   ;;  %s873_s21 = sphi %s924_s21, %s1259_s21  }
   0x4   : > { %s949_s27 = sadd.s32 1, %s885_s24   ;;  %s157_s28 = sadd.s32 1, %s881_s23 }
   0x5   : > { %s154_s29 = ssub.s32 %s885_s24, %s949_s27  ;;  %p167_p0 = scmp.ne.s32.totalorder %s881_s23, %s877_s22 }
   0x6   : > { %p155_p1 = scmp.eq.s32.totalorder %s154_s29, 0  ;;  %p168_p2 = scmp.eq.s32.totalorder %s945_s25, 1 }
   0x7   : > { %p173_p3 = scmp.ne.s32.totalorder %s877_s22, %s873_s21  ;;  %p174_p4 = scmp.eq.s32.totalorder %s692_s26, 1 }
   0x8   : > { %s960_s30 = scalar_select %p155_p1, %s881_s23, %s157_s28  }
   0x9   : > { %p962_p5 = por %p168_p2, %p167_p0  ;;  %p966_p6 = por %p174_p4, %p173_p3 }
   0xa   : > { %p695_p7 = scmp.ge.s32.totalorder %s885_s24, 1  ;;  %p216_p8 = scmp.lt.s32.totalorder %s885_s24, 3 }
   0xc   : > { %p217_p9 = pnand %p695_p7, %p216_p8 }
   0xd   : > { %v257_v0 = vld [vmem:[%s1251_s1 + $0x8] sm:$0xff] (!%p217_p9)  ;;  %v259_v1 = vld [vmem:[%s1251_s1 + $0x18] sm:$0xff] (!%p217_p9)  ;;  %v256_v2 = vld [vmem:[%s1251_s1] sm:$0xff] (!%p217_p9)  ;;  %v887_v7 = vmov (!%p217_p9), 0.0   ;;  %s697_s29 = sshll.u32 (!%p217_p9), %s945_s25, 2  ;;  %v387_v53 = vlaneseq (!%p217_p9)  ;;  %s243_s9 = sand.u32 (!%p217_p9), 1, %s877_s22  }
   0xe   : > { %220 = sbr.rel (%p217_p9) target bundleno = 791 (0x317), region = 44  ;;  %v707_v3 = vpack.c.bf16 (!%p217_p9), %v259_v1, %v257_v0  ;;  %v258_v4 = vld [vmem:[%s1251_s1 + $0x10] sm:$0xff] (!%p217_p9)  ;;  %v261_v5 = vld [vmem:[%s1251_s1 + $0x28] sm:$0xff] (!%p217_p9)  ;;  %v263_v6 = vld [vmem:[%s1251_s1 + $0x38] sm:$0xff] (!%p217_p9)  ;;  %352 = vmatprep.mubr.f32.mxu0 (!%p217_p9), %v887_v7  ;;  %364 = vmatprep.mubr.f32.mxu1 (!%p217_p9), %v887_v7  ;;  %p247_p10 = scmp.lt.s32.totalorder (!%p217_p9), %s697_s29, 7  ;;  %vm617_vm0 = vcmask (!%p217_p9), 261120  }
   0xf   : > { %v709_v8 = vpack.c.bf16 (!%p217_p9), %v258_v4, %v256_v2  ;;  %v711_v9 = vpack.c.bf16 (!%p217_p9), %v263_v6, %v261_v5  ;;  %v260_v10 = vld [vmem:[%s1251_s1 + $0x20] sm:$0xff] (!%p217_p9)  ;;  %v262_v11 = vld [vmem:[%s1251_s1 + $0x30] sm:$0xff] (!%p217_p9)  ;;  %v265_v12 = vld [vmem:[%s1251_s1 + $0x48] sm:$0xff] (!%p217_p9)  ;;  %v388_v54 = vshrl.u32 (!%p217_p9), %v387_v53, 7  ;;  %s696_s10 = sshll.u32 (!%p217_p9), %s243_s9, 3  ;;  %s704_s11 = sshll.u32 (!%p217_p9), %s945_s25, 7 }
  0x10   : > { %708 = vmatprep.subr.bf16.mxu0 (!%p217_p9), %v707_v3  ;;  %739 = vmatprep.subr.bf16.mxu1 (!%p217_p9), %v707_v3  ;;  %v267_v13 = vld [vmem:[%s1251_s1 + $0x58] sm:$0xff] (!%p217_p9)  ;;  %v713_v14 = vpack.c.bf16 (!%p217_p9), %v262_v11, %v260_v10  ;;  %v264_v16 = vld [vmem:[%s1251_s1 + $0x40] sm:$0xff] (!%p217_p9)  ;;  %v266_v17 = vld [vmem:[%s1251_s1 + $0x50] sm:$0xff] (!%p217_p9)  ;;  %s245_s12 = scalar_lea.vmem (!%p217_p9), [#allocation2], %s696_s10  ;;  %s1208_s16 = scalar_lea.hbm (!%p217_p9), %s1256_s6, %s704_s11 }
  0x11   : > { %710 = vmatpush1.bf16.msra.mxu0 (!%p217_p9), %v709_v8  ;;  %747 = vmatpush1.bf16.msra.mxu1 (!%p217_p9), %v709_v8  ;;  %v715_v15 = vpack.c.bf16 (!%p217_p9), %v267_v13, %v265_v12  ;;  %v269_v18 = vld [vmem:[%s1251_s1 + $0x68] sm:$0xff] (!%p217_p9)  ;;  %v271_v19 = vld [vmem:[%s1251_s1 + $0x78] sm:$0xff] (!%p217_p9)  ;;  %v717_v20 = vpack.c.bf16 (!%p217_p9), %v266_v17, %v264_v16  ;;  %v268_v22 = vld [vmem:[%s1251_s1 + $0x60] sm:$0xff] (!%p217_p9)  ;;  %v393_v55 = vsub.s32 (!%p217_p9), 1, %v388_v54  ;;  %v389_v59 = vsub.s32 (!%p217_p9), 0, %v388_v54  ;;  %s633_s13 = sshll.u32 (!%p217_p9), %s245_s12, 4  ;;  %s1210_s13 = int_to_ptr.vmem [resolvable:$true] %s633_s13 }
  0x12   : > { %712 = vmatprep.subr.bf16.mxu0 (!%p217_p9), %v711_v9  ;;  %740 = vmatprep.subr.bf16.mxu1 (!%p217_p9), %v711_v9  ;;  %v719_v21 = vpack.c.bf16 (!%p217_p9), %v271_v19, %v269_v18  ;;  %v270_v23 = vld [vmem:[%s1251_s1 + $0x70] sm:$0xff] (!%p217_p9)  ;;  %v273_v24 = vld [vmem:[%s1251_s1 + $0x88] sm:$0xff] (!%p217_p9)  ;;  %v275_v25 = vld [vmem:[%s1251_s1 + $0x98] sm:$0xff] (!%p217_p9)  ;;  %s620_s17 = scalar_lea.sflag (!%p217_p9), [#allocation3], %s243_s9  ;;  %s888_s25 = smov (!%p217_p9), [#allocation2]  }
  0x13   : > { %v721_v26 = vpack.c.bf16 (!%p217_p9), %v270_v23, %v268_v22  ;;  %v723_v27 = vpack.c.bf16 (!%p217_p9), %v275_v25, %v273_v24  ;;  %v272_v28 = vld [vmem:[%s1251_s1 + $0x80] sm:$0xff] (!%p217_p9)  ;;  %v274_v29 = vld [vmem:[%s1251_s1 + $0x90] sm:$0xff] (!%p217_p9)  ;;  %v277_v30 = vld [vmem:[%s1251_s1 + $0xa8] sm:$0xff] (!%p217_p9) }
  0x14   : > { %v279_v31 = vld [vmem:[%s1251_s1 + $0xb8] sm:$0xff] (!%p217_p9)  ;;  %v725_v32 = vpack.c.bf16 (!%p217_p9), %v274_v29, %v272_v28  ;;  %v276_v34 = vld [vmem:[%s1251_s1 + $0xa0] sm:$0xff] (!%p217_p9)  ;;  %v278_v35 = vld [vmem:[%s1251_s1 + $0xb0] sm:$0xff] (!%p217_p9) }
  0x15   : > { %714 = vmatpush1.bf16.msra.mxu0 %v713_v14  ;;  %748 = vmatpush1.bf16.msra.mxu1 %v713_v14  ;;  %v727_v33 = vpack.c.bf16 %v279_v31, %v277_v30  ;;  %v281_v36 = vld [vmem:[%s1251_s1 + $0xc8] sm:$0xff]  ;;  %v283_v37 = vld [vmem:[%s1251_s1 + $0xd8] sm:$0xff]  ;;  %v729_v38 = vpack.c.bf16 %v278_v35, %v276_v34  ;;  %v280_v40 = vld [vmem:[%s1251_s1 + $0xc0] sm:$0xff]  ;;  %s1264_s29 = smov (!%p247_p10, %s697_s29), 7 }
  0x16   : > { %716 = vmatprep.subr.bf16.mxu0 %v715_v15  ;;  %741 = vmatprep.subr.bf16.mxu1 %v715_v15  ;;  %v731_v39 = vpack.c.bf16 %v283_v37, %v281_v36  ;;  %v282_v41 = vld [vmem:[%s1251_s1 + $0xd0] sm:$0xff]  ;;  %v285_v42 = vld [vmem:[%s1251_s1 + $0xe8] sm:$0xff]  ;;  %v287_v43 = vld [vmem:[%s1251_s1 + $0xf8] sm:$0xff]  ;;  %s698_s15 = sshll.u32 %s1264_s29, 3  ;;  %s827_s29 = sshll.u32 %s888_s25, 4  ;;  %s828_s29 = int_to_ptr.vmem [resolvable:$false] %s827_s29 }
  0x17   : > { %v733_v44 = vpack.c.bf16 %v282_v41, %v280_v40  ;;  %v735_v45 = vpack.c.bf16 %v287_v43, %v285_v42  ;;  %v284_v46 = vld [vmem:[%s1251_s1 + $0xe0] sm:$0xff]  ;;  %v286_v47 = vld [vmem:[%s1251_s1 + $0xf0] sm:$0xff]  ;;  %s250_s18 = scalar_lea.vmem %s1250_s0, %s698_s15  ;;  %v1082_v63 = vld [vmem:[%s1255_s5 + $0x28] sm:$0xff]  ;;  %s829_s19 = scalar_lea.vmem %s828_s29, 256 }
  0x18   : > { %v737_v48 = vpack.c.bf16 %v286_v47, %v284_v46  ;;  %v252_v49 = vld [vmem:[%s250_s18] sm:$0xff]  ;;  %v254_v50 = vld [vmem:[%s250_s18 + $0x10] sm:$0xff]  ;;  %v253_v51 = vld [vmem:[%s250_s18 + $0x8] sm:$0xff]  ;;  %p830_p0 = scmp.lt.s32.totalorder %s1210_s13, %s828_s29 }
  0x19   : > { %718 = vmatpush1.bf16.msra.mxu0 %v717_v20  ;;  %749 = vmatpush1.bf16.msra.mxu1 %v717_v20  ;;  %v255_v52 = vld [vmem:[%s250_s18 + $0x18] sm:$0xff]  ;;  %v385_v56 = vld [vmem:[%s1252_s2] sm:$0x3]  ;;  %v1087_v0 = vld [vmem:[%s1255_s5 + $0x8] sm:$0xff]  ;;  %s823_s18 = scalar_lea.vmem %s1210_s13, 128 }
  0x1a   : > { %720 = vmatprep.subr.bf16.mxu0 %v719_v21  ;;  %742 = vmatprep.subr.bf16.mxu1 %v719_v21  ;;  %v394_v57 = vrot.slane %v385_v56, %v393_v55  ;;  %v390_v3 = vrot.slane %v385_v56, %v389_v59  ;;  %v384_v10 = vld [vmem:[%s1255_s5 + $0x38] sm:$0xff]  ;;  %v379_v18 = vld [vmem:[%s1255_s5 + $0x10] sm:$0xff]  ;;  %v377_v19 = vld [vmem:[%s1255_s5] sm:$0xff]  ;;  %p824_p11 = scmp.ne.s32.totalorder %s1210_s13, %s823_s18  ;;  %p831_p1 = scmp.lt.s32.totalorder %s829_s19, %s823_s18 }
  0x1b   : > { %v380_v11 = vld [vmem:[%s1255_s5 + $0x18] sm:$0xff]  ;;  %v383_v24 = vld [vmem:[%s1255_s5 + $0x30] sm:$0xff]  ;;  %v381_v25 = vld [vmem:[%s1255_s5 + $0x20] sm:$0xff] }
  0x1c   : > { %p825_p12 = pnand %p824_p11, %p962_p5  ;;  %p832_p2 = por %p831_p1, %p830_p0 }
  0x1d   : > { %722 = vmatpush1.bf16.msra.mxu0 %v721_v26  ;;  %750 = vmatpush1.bf16.msra.mxu1 %v721_v26 }
  0x1e   : > { %724 = vmatprep.subr.bf16.mxu0 %v723_v27  ;;  %743 = vmatprep.subr.bf16.mxu1 %v723_v27  ;;  %p826_p13 = pneg %p825_p12 }
  0x20   : > { %p833_p3 = pnand %p832_p2, %p826_p13 }
  0x21   : > { %726 = vmatpush1.bf16.msra.mxu0 %v725_v32  ;;  %751 = vmatpush1.bf16.msra.mxu1 %v725_v32 }
  0x22   : > { %728 = vmatprep.subr.bf16.mxu0 %v727_v33  ;;  %744 = vmatprep.subr.bf16.mxu1 %v727_v33 }
  0x25   : > { %730 = vmatpush1.bf16.msra.mxu0 %v729_v38  ;;  %752 = vmatpush1.bf16.msra.mxu1 %v729_v38 }
  0x26   : > { %732 = vmatprep.subr.bf16.mxu0 %v731_v39  ;;  %745 = vmatprep.subr.bf16.mxu1 %v731_v39 }
  0x29   : > { %734 = vmatpush1.bf16.msra.mxu0 %v733_v44  ;;  %753 = vmatpush1.bf16.msra.mxu1 %v733_v44 }
  0x2a   : > { %736 = vmatprep.subr.bf16.mxu0 %v735_v45  ;;  %746 = vmatprep.subr.bf16.mxu1 %v735_v45 }
  0x2d   : > { %738 = vmatpush1.bf16.msra.mxu0 %v737_v48  ;;  %754 = vmatpush1.bf16.msra.mxu1 %v737_v48 }
  0x30   : > { %353 = vmatmul.mubr.f32.vlgmr.msra.gmra.mrb[0].mxu0 %v252_v49  ;;  %365 = vmatmul.mubr.f32.vlgmr.msra.gmra.mrb[0].mxu1 %v254_v50 }
  0x31   : > { %358 = vmatprep.mubr.f32.mxu0 %v887_v7  ;;  %370 = vmatprep.mubr.f32.mxu1 %v887_v7 }
  0x34   : > { %359 = vmatmul.mubr.f32.gmra.mrb[2].mxu0 %v253_v51  ;;  %371 = vmatmul.mubr.f32.gmra.mrb[2].mxu1 %v255_v52 }
 0x103   : > { %v354_v58 = vpop.f32.mrb[0].mxu0  ;;  %v366_v60 = vpop.f32.mrb[0].mxu1 }
 0x104   : > { %v356_v61 = vpop.f32.mrb[1].mxu0  ;;  %v368_v62 = vpop.f32.mrb[1].mxu1  ;;  %v397_v14 = vadd.f32 %v390_v3, %v354_v58  ;;  %v401_v20 = vadd.f32 %v390_v3, %v366_v60 }
 0x105   : > { %v398_v1 = vadd.f32 %v394_v57, %v356_v61  ;;  %v402_v2 = vadd.f32 %v394_v57, %v368_v62 }
 0x106   : > { %v405_v23 = vmul.f32 %v397_v14, %v377_v19  ;;  %v409_v27 = vmul.f32 %v401_v20, %v381_v25 }
 0x107   : > { %v360_v4 = vpop.f32.mrb[2].mxu0  ;;  %v372_v5 = vpop.f32.mrb[2].mxu1  ;;  %v1090_v6 = vmul.f32 %v402_v2, %v1082_v63  ;;  %v406_v7 = vmul.f32 %v398_v1, %v1087_v0 }
 0x108   : > { %v362_v8 = vpop.f32.mrb[3].mxu0  ;;  %v374_v9 = vpop.f32.mrb[3].mxu1  ;;  %v399_v15 = vadd.f32 %v390_v3, %v360_v4  ;;  %v403_v21 = vadd.f32 %v390_v3, %v372_v5 }
 0x109   : > { %v400_v12 = vadd.f32 %v394_v57, %v362_v8  ;;  %v404_v13 = vadd.f32 %v394_v57, %v374_v9  ;;  %495 = vadd.xlane.f32.xlu1 %v1090_v6  ;;  %491 = vadd.xlane.f32.xlu0 %v406_v7 }
 0x10a   : > { %v407_v22 = vmul.f32 %v399_v15, %v379_v18  ;;  %v411_v26 = vmul.f32 %v403_v21, %v383_v24 }
 0x10b   : > { %v412_v16 = vmul.f32 %v404_v13, %v384_v10  ;;  %v408_v17 = vmul.f32 %v400_v12, %v380_v11 }
 0x10d   : > { %497 = vadd.xlane.f32.xlu1 %v412_v16  ;;  %493 = vadd.xlane.f32.xlu0 %v408_v17 }
 0x111   : > { %431 = vadd.xlane.f32.xlu1 %v407_v22  ;;  %429 = vadd.xlane.f32.xlu0 %v405_v23 }
 0x115   : > { %435 = vadd.xlane.f32.xlu1 %v411_v26  ;;  %433 = vadd.xlane.f32.xlu0 %v409_v27 }
 0x196   : > { %v496_v28 = vpop.xlane.xlu1 %495  ;;  %v492_v29 = vpop.xlane.xlu0 %491 }
 0x19a   : > { %v498_v30 = vpop.xlane.xlu1 %497  ;;  %v494_v31 = vpop.xlane.xlu0 %493 }
 0x19b   : > { %v499_v32 = vadd.f32 %v494_v31, %v492_v29 }
 0x19d   : > { %v500_v33 = vadd.f32 %v499_v32, %v496_v28 }
 0x19e   : > { %v432_v34 = vpop.xlane.xlu1 %431  ;;  %v430_v35 = vpop.xlane.xlu0 %429 }
 0x19f   : > { %v501_v36 = vadd.f32 %v500_v33, %v498_v30  ;;  %v437_v38 = vadd.f32 %v432_v34, %v430_v35 }
 0x1a1   : > { %v502_v37 = vrot.slane %v501_v36, 4 }
 0x1a2   : > { %v434_v39 = vpop.xlane.xlu0 %433  ;;  %v436_v42 = vpop.xlane.xlu1 %435 }
 0x1a3   : > { %v503_v40 = vadd.f32 %v502_v37, %v501_v36  ;;  %v438_v41 = vadd.f32 %v437_v38, %v434_v39 }
 0x1a5   : > { %v504_v43 = vrot.slane %v503_v40, 2  ;;  %v439_v44 = vadd.f32 %v438_v41, %v436_v42 }
 0x1a7   : > { %v505_v45 = vadd.f32 %v504_v43, %v503_v40  ;;  %v440_v46 = vrot.slane %v439_v44, 4 }
 0x1a9   : > { %v506_v47 = vrot.slane %v505_v45, 1  ;;  %v441_v48 = vadd.f32 %v440_v46, %v439_v44  ;;  %v414_v46 = vld [vmem:[%s1253_s3 + $0x8] sm:$0xff] }
 0x1ab   : > { %v507_v49 = vadd.f32 %v506_v47, %v505_v45  ;;  %v442_v50 = vrot.slane %v441_v48, 2 }
 0x1ad   : > { %v508_v51 = vmul.f32 0.00390625, %v507_v49  ;;  %v443_v52 = vadd.f32 %v442_v50, %v441_v48  ;;  %v416_v48 = vld [vmem:[%s1253_s3 + $0x18] sm:$0xff]  ;;  %v418_v49 = vld [vmem:[%s1253_s3 + $0x28] sm:$0xff] }
 0x1ae   : > { %v420_v50 = vld [vmem:[%s1253_s3 + $0x38] sm:$0xff] }
 0x1af   : > { %v444_v53 = vrot.slane %v443_v52, 1  ;;  %v510_v54 = vsub.f32 %v408_v17, %v508_v51  ;;  %v509_v55 = vsub.f32 %v406_v7, %v508_v51  ;;  %v512_v56 = vsub.f32 %v412_v16, %v508_v51 }
 0x1b0   : > { %v511_v57 = vsub.f32 %v1090_v6, %v508_v51 }
 0x1b1   : > { %v445_v58 = vadd.f32 %v444_v53, %v443_v52  ;;  %v1113_v59 = vmul.f32 %v510_v54, %v380_v11  ;;  %v1116_v60 = vmul.f32 %v509_v55, %v1087_v0  ;;  %v1118_v61 = vmul.f32 %v512_v56, %v384_v10  ;;  %v422_v55 = vld [vmem:[%s1254_s4 + $0x8] sm:$0xff]  ;;  %v424_v56 = vld [vmem:[%s1254_s4 + $0x18] sm:$0xff] }
 0x1b2   : > { %v1121_v62 = vmul.f32 %v511_v57, %v1082_v63  ;;  %v426_v57 = vld [vmem:[%s1254_s4 + $0x28] sm:$0xff] }
 0x1b3   : > { %v446_v1 = vmul.f32 0.00390625, %v445_v58  ;;  %v518_v2 = vmul.f32 %v1113_v59, %v1113_v59  ;;  %v517_v3 = vmul.f32 %v1116_v60, %v1116_v60  ;;  %v520_v0 = vmul.f32 %v1118_v61, %v1118_v61 }
 0x1b4   : > { %v519_v6 = vmul.f32 %v1121_v62, %v1121_v62 }
 0x1b5   : > { %523 = vadd.xlane.f32.xlu1 %v518_v2  ;;  %521 = vadd.xlane.f32.xlu0 %v517_v3  ;;  %v448_v4 = vsub.f32 %v407_v22, %v446_v1  ;;  %v447_v5 = vsub.f32 %v405_v23, %v446_v1  ;;  %v450_v8 = vsub.f32 %v411_v26, %v446_v1 }
 0x1b6   : > { %v449_v9 = vsub.f32 %v409_v27, %v446_v1 }
 0x1b7   : > { %v1131_v7 = vmul.f32 %v448_v4, %v379_v18  ;;  %v1133_v63 = vmul.f32 %v447_v5, %v377_v19  ;;  %v1139_v12 = vmul.f32 %v450_v8, %v383_v24 }
 0x1b8   : > { %v1141_v13 = vmul.f32 %v449_v9, %v381_v25 }
 0x1b9   : > { %527 = vadd.xlane.f32.xlu1 %v520_v0  ;;  %525 = vadd.xlane.f32.xlu0 %v519_v6  ;;  %v456_v10 = vmul.f32 %v1131_v7, %v1131_v7  ;;  %v455_v11 = vmul.f32 %v1133_v63, %v1133_v63  ;;  %v458_v14 = vmul.f32 %v1139_v12, %v1139_v12 }
 0x1ba   : > { %v457_v15 = vmul.f32 %v1141_v13, %v1141_v13 }
 0x1bd   : > { %461 = vadd.xlane.f32.xlu1 %v456_v10  ;;  %459 = vadd.xlane.f32.xlu0 %v455_v11  ;;  %v413_v10 = vld [vmem:[%s1253_s3] sm:$0xff] }
 0x1c1   : > { %465 = vadd.xlane.f32.xlu1 %v458_v14  ;;  %463 = vadd.xlane.f32.xlu0 %v457_v15  ;;  %v421_v15 = vld [vmem:[%s1254_s4] sm:$0xff] }
 0x242   : > { %v524_v16 = vpop.xlane.xlu1 %523  ;;  %v522_v17 = vpop.xlane.xlu0 %521 }
 0x243   : > { %v529_v18 = vadd.f32 %v524_v16, %v522_v17  ;;  %v415_v17 = vld [vmem:[%s1253_s3 + $0x10] sm:$0xff] }
 0x246   : > { %v528_v19 = vpop.xlane.xlu1 %527  ;;  %v526_v20 = vpop.xlane.xlu0 %525 }
 0x247   : > { %v530_v21 = vadd.f32 %v529_v18, %v526_v20 }
 0x249   : > { %v531_v22 = vadd.f32 %v530_v21, %v528_v19  ;;  %v423_v21 = vld [vmem:[%s1254_s4 + $0x10] sm:$0xff] }
 0x24a   : > { %v462_v23 = vpop.xlane.xlu1 %461  ;;  %v460_v24 = vpop.xlane.xlu0 %459 }
 0x24b   : > { %v532_v25 = vrot.slane %v531_v22, 4  ;;  %v467_v27 = vadd.f32 %v462_v23, %v460_v24 }
 0x24d   : > { %v533_v26 = vadd.f32 %v532_v25, %v531_v22  ;;  %v417_v22 = vld [vmem:[%s1253_s3 + $0x20] sm:$0xff] }
 0x24e   : > { %v464_v28 = vpop.xlane.xlu0 %463  ;;  %v466_v31 = vpop.xlane.xlu1 %465 }
 0x24f   : > { %v534_v29 = vrot.slane %v533_v26, 2  ;;  %v468_v30 = vadd.f32 %v467_v27, %v464_v28 }
 0x251   : > { %v535_v32 = vadd.f32 %v534_v29, %v533_v26  ;;  %v469_v33 = vadd.f32 %v468_v30, %v466_v31  ;;  %v419_v29 = vld [vmem:[%s1253_s3 + $0x30] sm:$0xff] }
 0x253   : > { %v536_v34 = vrot.slane %v535_v32, 1  ;;  %v470_v35 = vrot.slane %v469_v33, 4 }
 0x255   : > { %v537_v36 = vadd.f32 %v536_v34, %v535_v32  ;;  %v471_v37 = vadd.f32 %v470_v35, %v469_v33  ;;  %v427_v34 = vld [vmem:[%s1254_s4 + $0x30] sm:$0xff] }
 0x257   : > { %v538_v38 = vmul.f32 0.00390625, %v537_v36  ;;  %v472_v39 = vrot.slane %v471_v37, 2 }
 0x259   : > { %v539_v40 = vadd.f32 1e-05, %v538_v38  ;;  %v473_v41 = vadd.f32 %v472_v39, %v471_v37 }
 0x25b   : > { %795 = vrsqrt.f32 %v539_v40  ;;  %v474_v42 = vrot.slane %v473_v41, 1 }
 0x25d   : > { %v475_v43 = vadd.f32 %v474_v42, %v473_v41 }
 0x25f   : > { %v476_v44 = vmul.f32 0.00390625, %v475_v43 }
 0x261   : > { %v477_v45 = vadd.f32 1e-05, %v476_v44 }
 0x263   : > { %797 = vrsqrt.f32 %v477_v45 }
 0x265   : > { %v796_v47 = vpop.eup %795 }
 0x266   : > { %v541_v51 = vmul.f32 %v796_v47, %v1116_v60  ;;  %v542_v52 = vmul.f32 %v796_v47, %v1113_v59  ;;  %v543_v53 = vmul.f32 %v796_v47, %v1121_v62  ;;  %v544_v54 = vmul.f32 %v796_v47, %v1118_v61  ;;  %v428_v61 = vld [vmem:[%s1254_s4 + $0x38] sm:$0xff] }
 0x268   : > { %v545_v58 = vmul.f32 %v541_v51, %v414_v46  ;;  %v546_v60 = vmul.f32 %v542_v52, %v416_v48  ;;  %v547_v1 = vmul.f32 %v543_v53, %v418_v49  ;;  %v548_v59 = vmul.f32 %v544_v54, %v420_v50 }
 0x26a   : > { %v549_v62 = vadd.f32 %v545_v58, %v422_v55  ;;  %v550_v2 = vadd.f32 %v546_v60, %v424_v56  ;;  %v551_v3 = vadd.f32 %v547_v1, %v426_v57  ;;  %v552_v6 = vadd.f32 %v548_v59, %v428_v61 }
 0x26c   : > { %v699_v4 = vmul.f32 -1.442695, %v549_v62  ;;  %v700_v5 = vmul.f32 -1.442695, %v550_v2  ;;  %v701_v0 = vmul.f32 -1.442695, %v551_v3 }
 0x26d   : > { %v798_v8 = vpop.eup %797  ;;  %v702_v11 = vmul.f32 -1.442695, %v552_v6 }
 0x26e   : > { %v479_v9 = vmul.f32 %v798_v8, %v1133_v63  ;;  %799 = vpow2.f32 %v699_v4  ;;  %v480_v16 = vmul.f32 %v798_v8, %v1131_v7  ;;  %v481_v19 = vmul.f32 %v798_v8, %v1141_v13  ;;  %v425_v13 = vld [vmem:[%s1254_s4 + $0x20] sm:$0xff] }
 0x26f   : > { %801 = vpow2.f32 %v700_v5  ;;  %v482_v28 = vmul.f32 %v798_v8, %v1139_v12 }
 0x270   : > { %803 = vpow2.f32 %v701_v0  ;;  %v483_v14 = vmul.f32 %v479_v9, %v413_v10  ;;  %v484_v18 = vmul.f32 %v480_v16, %v415_v17  ;;  %v485_v27 = vmul.f32 %v481_v19, %v417_v22 }
 0x271   : > { %805 = vpow2.f32 %v702_v11  ;;  %v486_v33 = vmul.f32 %v482_v28, %v419_v29 }
 0x272   : > { %v487_v63 = vadd.f32 %v483_v14, %v421_v15  ;;  %v488_v26 = vadd.f32 %v484_v18, %v423_v21  ;;  %v489_v32 = vadd.f32 %v485_v27, %v425_v13 }
 0x273   : > { %v490_v35 = vadd.f32 %v486_v33, %v427_v34 }
 0x274   : > { %807 = vtanh.f32 %v487_v63 }
 0x278   : > { %v800_v20 = vpop.eup %799 }
 0x279   : > { %v802_v23 = vpop.eup %801  ;;  %v569_v7 = vadd.f32 1.0, %v800_v20 }
 0x27a   : > { %v804_v24 = vpop.eup %803  ;;  %v570_v25 = vadd.f32 1.0, %v802_v23 }
 0x27b   : > { %809 = vrcp.f32 %v569_v7  ;;  %v571_v30 = vadd.f32 1.0, %v804_v24  ;;  %v806_v31 = vpop.eup %805 }
 0x27c   : > { %811 = vrcp.f32 %v570_v25  ;;  %v572_v12 = vadd.f32 1.0, %v806_v31 }
 0x27d   : > { %813 = vtanh.f32 %v488_v26 }
 0x27e   : > { %815 = vrcp.f32 %v571_v30  ;;  %v808_v36 = vpop.eup %807 }
 0x27f   : > { %817 = vtanh.f32 %v489_v32 }
 0x280   : > { %819 = vrcp.f32 %v572_v12 }
 0x281   : > { %821 = vtanh.f32 %v490_v35 }
 0x285   : > { %v810_v37 = vpop.eup %809 }
 0x286   : > { %v581_v38 = vmul.f32 %v810_v37, %v808_v36  ;;  %v812_v39 = vpop.eup %811 }
 0x287   : > { %v814_v40 = vpop.eup %813 }
 0x288   : > { %585 = vxpose.xlu0.b32.start [1/4] (short) (narrow) %v581_v38, 8  ;;  %v582_v41 = vmul.f32 %v814_v40, %v812_v39  ;;  %v816_v42 = vpop.eup %815 }
 0x289   : > { %v818_v43 = vpop.eup %817 }
 0x28a   : > { %v583_v44 = vmul.f32 %v818_v43, %v816_v42  ;;  %v820_v45 = vpop.eup %819 }
 0x28b   : > { %v822_v46 = vpop.eup %821 }
 0x28c   : > { %586 = vxpose.xlu0.b32.cont [2/4] (short) (narrow) %v582_v41, 8  ;;  %v584_v47 = vmul.f32 %v822_v46, %v820_v45 }
 0x290   : > { %587 = vxpose.xlu0.b32.cont [3/4] (short) (narrow) %v583_v44, 8 }
 0x294   : > { %588 = vxpose.xlu0.b32.end [4/4] (short) (narrow) %v584_v47, 8 }
 0x308   : > { %v601_v48 = vpop.trf.xlu0 }
 0x309   : > { %618 = vst.msk [vmem:[%s245_s12] sm:$0xff] %vm617_vm0, %v601_v48 }
 0x30a   : > { %836 = shalt.err (!%p833_p3)
}
 0x30b   : > { %s837_s20 = scalar_lea.hbm %s1208_s16, 128  ;;  %s841_s9 = scalar_lea.hbm %s1256_s6, 256 }
 0x30c   : > { %p838_p4 = scmp.ne.s32.totalorder %s1208_s16, %s837_s20  ;;  %p842_p9 = scmp.lt.u32.totalorder %s1208_s16, %s1256_s6 }
 0x30d   : > { %p843_p10 = scmp.lt.u32.totalorder %s841_s9, %s837_s20  ;;  %p845_p12 = scmp.lt.u32.totalorder %s837_s20, %s1208_s16 }
 0x30e   : > { %p839_p7 = pnand %p838_p4, %p962_p5 }
 0x30f   : > { %p844_p11 = por %p843_p10, %p842_p9 }
 0x310   : > { %p840_p8 = pneg %p839_p7 }
 0x311   : > { %p846_p13 = por %p845_p12, %p844_p11 }
 0x313   : > { %p847_p0 = pnand %p846_p13, %p840_p8 }
 0x315   : > { %850 = shalt.err (!%p847_p0)
}
 0x316   : > { %755 = dma.vmem_to_hbm [thread:$0]  (%p962_p5), %s1210_s13, 128, %s1208_s16, %s620_s17  }
 0x317 PF: > { %p761_p1 = scmp.ge.s32.totalorder %s885_s24, 2  ;;  %s645_s12 = sand.u32 1, %s873_s21  }
 0x318   : > { %s646_s14 = scalar_lea.sflag [#allocation3], %s645_s12 }
 0x319   : > { %p758_p2 = pnand %p761_p1, %p966_p6 }
 0x31b   : > { %868 = dma.done.wait (!%p758_p2), %s646_s14, 128  }
 0x31c   : > { %870 = vsyncadd (!%p758_p2), %s646_s14, 4294967168  ;;  %p16_p3 = scmp.ge.s32.totalorder %s949_s27, 4   ;;  %s1259_s21 = smov %s877_s22 }
 0x31d   : > { %s1260_s22 = smov %s881_s23  ;;  %s1261_s23 = smov %s960_s30 }
 0x31e   : > { %s1262_s24 = smov %s949_s27  ;;  %18 = sbr.rel (!%p16_p3) target bundleno = 3 (0x3), region = 79 }
 0x325   :  { %651 = vsyncpa [#allocation3], 1 }
 0x326   :  { %653 = vsyncpa [#allocation3 + $0x1], 1 }

</bundles_post_ra>
